<compile_context>
chip_gen: v7x
topology: tpu7x:2x2x1
jax: 0.10.0
libtpu: 0.0.40
codegen_flags: <defaults>
</compile_context>

<pallas_src>
import functools

import jax
import jax.numpy as jnp
from jax import lax
from jax.experimental import pallas as pl
from jax.experimental.pallas import tpu as pltpu

EPS = 1e-5


# ---------------------------------------------------------------------------
# In-kernel helpers (traced inside the Pallas kernel body)
# ---------------------------------------------------------------------------
def _im2col(arr, shifts, L):
    """Stack lane-shifted copies of `arr` along the channel (row) axis.

    arr: (C, B*L) with batches laid out contiguously along the lane axis.
    shifts: static tuple of tap shifts s; shifted[..., l] = arr[..., l - s],
            zero-filled outside each batch's own [0, L) window (mask on lane % L).
    Returns (len(shifts)*C, B*L).
    One iota + one mask per distinct nonzero shift (hoisted out of any loops).
    """
    lane_mod = lax.broadcasted_iota(jnp.int32, arr.shape, arr.ndim - 1) % L
    BL = arr.shape[-1]
    parts = []
    for s in shifts:
        if s == 0:
            parts.append(arr)
            continue
        rolled = pltpu.roll(arr, shift=s % BL, axis=arr.ndim - 1)
        mask = (lane_mod >= s) if s > 0 else (lane_mod < L + s)
        parts.append(jnp.where(mask, rolled, 0.0))
    return jnp.concatenate(parts, axis=0)


def _bn_relu(y, gamma, beta):
    """Per-channel (row) training-mode BatchNorm + ReLU over all B*L positions.

    y: (C, B*L); gamma, beta: (C, 1). Biased variance, eps=1e-5.
    """
    n = float(y.shape[-1])
    mean = jnp.sum(y, axis=1, keepdims=True) / n
    var = jnp.sum((y - mean) ** 2, axis=1, keepdims=True) / n
    scale = gamma * lax.rsqrt(var + EPS)
    shift = beta - mean * scale
    return jnp.maximum(y * scale + shift, 0.0)


# ---------------------------------------------------------------------------
# Fused Pallas kernel: whole forward pass, everything VMEM resident
# ---------------------------------------------------------------------------
def inception_kernel(x_ref, wf_ref, bf_ref,
                     w2_ref, b2_ref, w3_ref, b3_ref,
                     bn2_g_ref, bn2_b_ref, bn3_g_ref, bn3_b_ref,
                     act_g_ref, act_b_ref,
                     out_ref, *, L):
    co = out_ref.shape[0]
    c4 = co // 4

    x = x_ref[...]                                           # (Ci, B*L)

    # ---- fused first stage: [branch1 | branch2.conv1 | branch3.conv1 | branch4]
    # k=1 convs zero-padded to k=3; single (co, 3*Ci) x (3*Ci, B*L) matmul.
    xs = _im2col(x, (1, 0, -1), L)                           # (3*Ci, B*L)
    pre = jnp.dot(wf_ref[...], xs,
                  preferred_element_type=jnp.float32) + bf_ref[...]   # (co, B*L)

    y1 = pre[0:c4]
    a2 = _bn_relu(pre[c4:2 * c4], bn2_g_ref[...], bn2_b_ref[...])
    a3 = _bn_relu(pre[2 * c4:3 * c4], bn3_g_ref[...], bn3_b_ref[...])
    y4 = pre[3 * c4:4 * c4]

    # ---- branch2 second conv: k=3, pad=1 -> one (c4, 3*c4) x (3*c4, B*L) dot ----
    a2s = _im2col(a2, (1, 0, -1), L)
    y2 = jnp.dot(w2_ref[...], a2s,
                 preferred_element_type=jnp.float32) + b2_ref[...]

    # ---- branch3 second conv: k=5, pad=2 -> one (c4, 5*c4) x (5*c4, B*L) dot ----
    a3s = _im2col(a3, (2, 1, 0, -1, -2), L)
    y3 = jnp.dot(w3_ref[...], a3s,
                 preferred_element_type=jnp.float32) + b3_ref[...]

    # ---- final BN + ReLU on the channel concat, one lane-dense full-tile store ----
    cat = jnp.concatenate([y1, y2, y3, y4], axis=0)          # (co, B*L)
    out_ref[...] = _bn_relu(cat, act_g_ref[...], act_b_ref[...])


# ---------------------------------------------------------------------------
# Wrapper: weight/layout prep (im2col weight stacking) + pallas_call
# ---------------------------------------------------------------------------
def inception_forward(x_ncw, params):
    B, cin, L = x_ncw.shape
    c4 = params["b1_w"].shape[0]
    co = 4 * c4
    BL = B * L
    f32 = jnp.float32

    # Activations enter the kernel as (Ci, B*L): batch folded into the lane axis.
    x = jnp.transpose(x_ncw.astype(f32), (1, 0, 2)).reshape(cin, BL)

    def stack_k(w):
        # PyTorch conv weight (Co, Ci, K) -> im2col weight (Co, K*Ci), k-major cols.
        return jnp.transpose(w.astype(f32), (0, 2, 1)).reshape(w.shape[0], -1)

    col = lambda v: v.astype(f32).reshape(-1, 1)

    # Fused first-stage weights: k=1 convs become k=3 convs with only the center
    # tap populated, so all four branches share one stacked (co, 3*cin) matmul.
    wf = jnp.zeros((co, 3, cin), f32)
    wf = wf.at[0:c4, 1, :].set(params["b1_w"][:, :, 0].astype(f32))          # branch1 k=1
    wf = wf.at[c4:2 * c4, 1, :].set(params["b2_w1"][:, :, 0].astype(f32))    # branch2 conv1 k=1
    wf = wf.at[2 * c4:3 * c4].set(jnp.transpose(params["b3_w1"].astype(f32), (0, 2, 1)))
    wf = wf.at[3 * c4:4 * c4].set(jnp.transpose(params["b4_w3"].astype(f32), (0, 2, 1)))
    wf = wf.reshape(co, 3 * cin)
    bf = jnp.concatenate([params["b1_b"], params["b2_b1"],
                          params["b3_b1"], params["b4_b3"]]).astype(f32).reshape(co, 1)

    args = [
        x, wf, bf,
        stack_k(params["b2_w3"]), col(params["b2_b3"]),
        stack_k(params["b3_w5"]), col(params["b3_b5"]),
        col(params["b2_g1"]), col(params["b2_be1"]),
        col(params["b3_g1"]), col(params["b3_be1"]),
        col(params["act_g"]), col(params["act_be"]),
    ]

    vmem = pl.BlockSpec(memory_space=pltpu.MemorySpace.VMEM)
    flops = 2 * BL * (co * 3 * cin + c4 * 3 * c4 + c4 * 5 * c4) + 12 * BL * co
    bytes_accessed = 4 * (sum(int(a.size) for a in args) + co * BL)

    out = pl.pallas_call(
        functools.partial(inception_kernel, L=L),
        out_shape=jax.ShapeDtypeStruct((co, BL), f32),
        in_specs=[vmem] * len(args),
        out_specs=vmem,
        cost_estimate=pl.CostEstimate(flops=int(flops),
                                      transcendentals=int(3 * co),
                                      bytes_accessed=int(bytes_accessed)),
    )(*args)

    # (co, B*L) -> (B, co, L): layout plumbing outside the kernel.
    return jnp.transpose(out.reshape(co, B, L), (1, 0, 2))


# ---------------------------------------------------------------------------
# Deterministic parameter init (PyTorch layout: conv W = (Cout, Cin, K))
# ---------------------------------------------------------------------------
def init_params(key, cin, co):
    c4 = co // 4
    ks = jax.random.split(key, 12)
    n = lambda k, shape, s: jax.random.normal(k, shape, jnp.float32) * s
    return {
        "b1_w": n(ks[0], (c4, cin, 1), 0.2), "b1_b": n(ks[1], (c4,), 0.1),
        "b2_w1": n(ks[2], (c4, cin, 1), 0.2), "b2_b1": n(ks[3], (c4,), 0.1),
        "b2_w3": n(ks[4], (c4, c4, 3), 0.2), "b2_b3": n(ks[5], (c4,), 0.1),
        "b3_w1": n(ks[6], (c4, cin, 3), 0.2), "b3_b1": n(ks[7], (c4,), 0.1),
        "b3_w5": n(ks[8], (c4, c4, 5), 0.2), "b3_b5": n(ks[9], (c4,), 0.1),
        "b4_w3": n(ks[10], (c4, cin, 3), 0.2), "b4_b3": n(ks[11], (c4,), 0.1),
        # BatchNorm affine params at PyTorch default init (weight=1, bias=0)
        "b2_g1": jnp.ones((c4,), jnp.float32), "b2_be1": jnp.zeros((c4,), jnp.float32),
        "b3_g1": jnp.ones((c4,), jnp.float32), "b3_be1": jnp.zeros((c4,), jnp.float32),
        "act_g": jnp.ones((co,), jnp.float32), "act_be": jnp.zeros((co,), jnp.float32),
    }


# ---------------------------------------------------------------------------
# Pure-JAX reference (NCW, matches PyTorch forward) for the correctness check
# ---------------------------------------------------------------------------
def _conv1d_ref(x, w, b, pad):
    y = lax.conv_general_dilated(x, w, window_strides=(1,), padding=[(pad, pad)],
                                 dimension_numbers=("NCH", "OIH", "NCH"))
    return y + b[None, :, None]


def _bn_relu_ref(x, g, be):
    mean = x.mean(axis=(0, 2), keepdims=True)
    var = ((x - mean) ** 2).mean(axis=(0, 2), keepdims=True)
    y = (x - mean) / jnp.sqrt(var + EPS) * g[None, :, None] + be[None, :, None]
    return jnp.maximum(y, 0.0)


def inception_ref(x, p):
    b1 = _conv1d_ref(x, p["b1_w"], p["b1_b"], 0)
    a2 = _bn_relu_ref(_conv1d_ref(x, p["b2_w1"], p["b2_b1"], 0), p["b2_g1"], p["b2_be1"])
    b2 = _conv1d_ref(a2, p["b2_w3"], p["b2_b3"], 1)
    a3 = _bn_relu_ref(_conv1d_ref(x, p["b3_w1"], p["b3_b1"], 1), p["b3_g1"], p["b3_be1"])
    b3 = _conv1d_ref(a3, p["b3_w5"], p["b3_b5"], 2)
    b4 = _conv1d_ref(x, p["b4_w3"], p["b4_b3"], 1)
    cat = jnp.concatenate([b1, b2, b3, b4], axis=1)
    return _bn_relu_ref(cat, p["act_g"], p["act_be"])


if __name__ == "__main__":
    B, CIN, CO, L = 2, 4, 8, 128     # L multiple of 128 -> lane-dense matmuls/stores
    key = jax.random.PRNGKey(0)
    kx, kp = jax.random.split(key)
    x = jax.random.normal(kx, (B, CIN, L), jnp.float32)   # PyTorch NCW input
    params = init_params(kp, CIN, CO)

    out = jax.block_until_ready(inception_forward(x, params))

    ref = inception_ref(x, params)
    assert out.shape == (B, CO, L)
    err = jnp.max(jnp.abs(out - ref))
    assert jnp.allclose(out, ref, atol=2e-3, rtol=2e-3), f"max abs err {err}"
    print("KERNEL_OK")
</pallas_src>

<mosaic_0001>
module attributes {stable_mosaic.version = 11 : i64} {
  func.func @inception_kernel(%arg0: memref<4x256xf32, #tpu.memory_space<vmem>>, %arg1: memref<8x12xf32, #tpu.memory_space<vmem>>, %arg2: memref<8x1xf32, #tpu.memory_space<vmem>>, %arg3: memref<2x6xf32, #tpu.memory_space<vmem>>, %arg4: memref<2x1xf32, #tpu.memory_space<vmem>>, %arg5: memref<2x10xf32, #tpu.memory_space<vmem>>, %arg6: memref<2x1xf32, #tpu.memory_space<vmem>>, %arg7: memref<2x1xf32, #tpu.memory_space<vmem>>, %arg8: memref<2x1xf32, #tpu.memory_space<vmem>>, %arg9: memref<2x1xf32, #tpu.memory_space<vmem>>, %arg10: memref<2x1xf32, #tpu.memory_space<vmem>>, %arg11: memref<8x1xf32, #tpu.memory_space<vmem>>, %arg12: memref<8x1xf32, #tpu.memory_space<vmem>>, %arg13: memref<8x256xf32, #tpu.memory_space<vmem>>) attributes {dimension_semantics = [], scalar_prefetch = 0 : i64, scratch_operands = 0 : i64, tpu.core_type = #tpu.core_type<tc>} {
    %c0 = arith.constant 0 : index
    %c0_0 = arith.constant 0 : index
    %0 = vector.load %arg0[%c0, %c0_0] : memref<4x256xf32, #tpu.memory_space<vmem>>, vector<4x256xf32>
    %1 = tpu.iota {dimensions = array<i32: 1>} : vector<4x256xi32>
    %c128_i32 = arith.constant 128 : i32
    %c0_i32 = arith.constant 0 : i32
    %2 = arith.cmpi eq, %c128_i32, %c0_i32 : i32
    %c1_i32 = arith.constant 1 : i32
    %3 = arith.select %2, %c1_i32, %c128_i32 : i32
    %4 = vector.broadcast %3 : i32 to vector<4x256xi32>
    %5 = arith.remsi %1, %4 : vector<4x256xi32>
    %c0_i32_1 = arith.constant 0 : i32
    %6 = vector.broadcast %c0_i32_1 : i32 to vector<4x256xi32>
    %7 = arith.cmpi ne, %5, %6 : vector<4x256xi32>
    %c0_i32_2 = arith.constant 0 : i32
    %8 = vector.broadcast %c0_i32_2 : i32 to vector<4x256xi32>
    %9 = arith.cmpi slt, %5, %8 : vector<4x256xi32>
    %c0_i32_3 = arith.constant 0 : i32
    %10 = arith.cmpi slt, %3, %c0_i32_3 : i32
    %11 = vector.broadcast %10 : i1 to vector<4x256xi1>
    %12 = vector.broadcast %11 : vector<4x256xi1> to vector<4x256xi1>
    %13 = arith.xori %9, %12 : vector<4x256xi1>
    %14 = arith.andi %13, %7 : vector<4x256xi1>
    %15 = vector.broadcast %3 : i32 to vector<4x256xi32>
    %16 = arith.addi %5, %15 : vector<4x256xi32>
    %17 = arith.select %14, %16, %5 : vector<4x256xi1>, vector<4x256xi32>
    %c1_i32_4 = arith.constant 1 : i32
    %18 = tpu.dynamic_rotate %0 by %c1_i32_4 dim 1 : vector<4x256xf32>, i32 -> vector<4x256xf32>
    %c1_i32_5 = arith.constant 1 : i32
    %19 = vector.broadcast %c1_i32_5 : i32 to vector<4x256xi32>
    %20 = arith.cmpi sge, %17, %19 : vector<4x256xi32>
    %cst = arith.constant 0.000000e+00 : f32
    %21 = vector.broadcast %cst : f32 to vector<4x256xf32>
    %22 = arith.select %20, %18, %21 : vector<4x256xi1>, vector<4x256xf32>
    %c255_i32 = arith.constant 255 : i32
    %23 = tpu.dynamic_rotate %0 by %c255_i32 dim 1 : vector<4x256xf32>, i32 -> vector<4x256xf32>
    %c127_i32 = arith.constant 127 : i32
    %24 = vector.broadcast %c127_i32 : i32 to vector<4x256xi32>
    %25 = arith.cmpi slt, %17, %24 : vector<4x256xi32>
    %cst_6 = arith.constant 0.000000e+00 : f32
    %26 = vector.broadcast %cst_6 : f32 to vector<4x256xf32>
    %27 = arith.select %25, %23, %26 : vector<4x256xi1>, vector<4x256xf32>
    %28 = tpu.concatenate %22, %0, %27 in 0 : vector<4x256xf32>, vector<4x256xf32>, vector<4x256xf32> -> vector<12x256xf32>
    %c0_7 = arith.constant 0 : index
    %c0_8 = arith.constant 0 : index
    %29 = vector.load %arg1[%c0_7, %c0_8] : memref<8x12xf32, #tpu.memory_space<vmem>>, vector<8x12xf32>
    %cst_9 = arith.constant dense<0.000000e+00> : vector<8x256xf32>
    %30 = tpu.matmul %29, %28, %cst_9 {dimension_numbers = #tpu.dot_dimension_numbers<[1], [0], [0], [1], [0, 0, 1, 1], [], []>} : vector<8x12xf32>, vector<12x256xf32>, vector<8x256xf32> -> vector<8x256xf32>
    %c0_10 = arith.constant 0 : index
    %c0_11 = arith.constant 0 : index
    %31 = vector.load %arg2[%c0_10, %c0_11] : memref<8x1xf32, #tpu.memory_space<vmem>>, vector<8x1xf32>
    %32 = vector.broadcast %31 : vector<8x1xf32> to vector<8x256xf32>
    %33 = arith.addf %30, %32 : vector<8x256xf32>
    %34 = vector.extract_strided_slice %33 {offsets = [0, 0], sizes = [2, 256], strides = [1, 1]} : vector<8x256xf32> to vector<2x256xf32>
    %35 = vector.extract_strided_slice %33 {offsets = [2, 0], sizes = [2, 256], strides = [1, 1]} : vector<8x256xf32> to vector<2x256xf32>
    %c0_12 = arith.constant 0 : index
    %c0_13 = arith.constant 0 : index
    %36 = vector.load %arg7[%c0_12, %c0_13] : memref<2x1xf32, #tpu.memory_space<vmem>>, vector<2x1xf32>
    %c0_14 = arith.constant 0 : index
    %c0_15 = arith.constant 0 : index
    %37 = vector.load %arg8[%c0_14, %c0_15] : memref<2x1xf32, #tpu.memory_space<vmem>>, vector<2x1xf32>
    %cst_16 = arith.constant dense<0.000000e+00> : vector<2xf32>
    %38 = vector.multi_reduction <add>, %35, %cst_16 [1] : vector<2x256xf32> to vector<2xf32>
    %39 = vector.shape_cast %38 : vector<2xf32> to vector<2x1xf32>
    %cst_17 = arith.constant 2.560000e+02 : f32
    %40 = vector.broadcast %cst_17 : f32 to vector<2x1xf32>
    %41 = arith.divf %39, %40 : vector<2x1xf32>
    %42 = vector.broadcast %41 : vector<2x1xf32> to vector<2x256xf32>
    %43 = arith.subf %35, %42 : vector<2x256xf32>
    %44 = arith.mulf %43, %43 : vector<2x256xf32>
    %cst_18 = arith.constant dense<0.000000e+00> : vector<2xf32>
    %45 = vector.multi_reduction <add>, %44, %cst_18 [1] : vector<2x256xf32> to vector<2xf32>
    %46 = vector.shape_cast %45 : vector<2xf32> to vector<2x1xf32>
    %cst_19 = arith.constant 2.560000e+02 : f32
    %47 = vector.broadcast %cst_19 : f32 to vector<2x1xf32>
    %48 = arith.divf %46, %47 : vector<2x1xf32>
    %cst_20 = arith.constant 9.99999974E-6 : f32
    %49 = vector.broadcast %cst_20 : f32 to vector<2x1xf32>
    %50 = arith.addf %48, %49 : vector<2x1xf32>
    %51 = math.rsqrt %50 : vector<2x1xf32>
    %52 = arith.mulf %36, %51 : vector<2x1xf32>
    %53 = arith.mulf %41, %52 : vector<2x1xf32>
    %54 = arith.subf %37, %53 : vector<2x1xf32>
    %55 = vector.broadcast %52 : vector<2x1xf32> to vector<2x256xf32>
    %56 = arith.mulf %35, %55 : vector<2x256xf32>
    %57 = vector.broadcast %54 : vector<2x1xf32> to vector<2x256xf32>
    %58 = arith.addf %56, %57 : vector<2x256xf32>
    %cst_21 = arith.constant 0.000000e+00 : f32
    %59 = vector.broadcast %cst_21 : f32 to vector<2x256xf32>
    %60 = arith.maximumf %58, %59 : vector<2x256xf32>
    %61 = vector.extract_strided_slice %33 {offsets = [4, 0], sizes = [2, 256], strides = [1, 1]} : vector<8x256xf32> to vector<2x256xf32>
    %c0_22 = arith.constant 0 : index
    %c0_23 = arith.constant 0 : index
    %62 = vector.load %arg9[%c0_22, %c0_23] : memref<2x1xf32, #tpu.memory_space<vmem>>, vector<2x1xf32>
    %c0_24 = arith.constant 0 : index
    %c0_25 = arith.constant 0 : index
    %63 = vector.load %arg10[%c0_24, %c0_25] : memref<2x1xf32, #tpu.memory_space<vmem>>, vector<2x1xf32>
    %cst_26 = arith.constant dense<0.000000e+00> : vector<2xf32>
    %64 = vector.multi_reduction <add>, %61, %cst_26 [1] : vector<2x256xf32> to vector<2xf32>
    %65 = vector.shape_cast %64 : vector<2xf32> to vector<2x1xf32>
    %cst_27 = arith.constant 2.560000e+02 : f32
    %66 = vector.broadcast %cst_27 : f32 to vector<2x1xf32>
    %67 = arith.divf %65, %66 : vector<2x1xf32>
    %68 = vector.broadcast %67 : vector<2x1xf32> to vector<2x256xf32>
    %69 = arith.subf %61, %68 : vector<2x256xf32>
    %70 = arith.mulf %69, %69 : vector<2x256xf32>
    %cst_28 = arith.constant dense<0.000000e+00> : vector<2xf32>
    %71 = vector.multi_reduction <add>, %70, %cst_28 [1] : vector<2x256xf32> to vector<2xf32>
    %72 = vector.shape_cast %71 : vector<2xf32> to vector<2x1xf32>
    %cst_29 = arith.constant 2.560000e+02 : f32
    %73 = vector.broadcast %cst_29 : f32 to vector<2x1xf32>
    %74 = arith.divf %72, %73 : vector<2x1xf32>
    %cst_30 = arith.constant 9.99999974E-6 : f32
    %75 = vector.broadcast %cst_30 : f32 to vector<2x1xf32>
    %76 = arith.addf %74, %75 : vector<2x1xf32>
    %77 = math.rsqrt %76 : vector<2x1xf32>
    %78 = arith.mulf %62, %77 : vector<2x1xf32>
    %79 = arith.mulf %67, %78 : vector<2x1xf32>
    %80 = arith.subf %63, %79 : vector<2x1xf32>
    %81 = vector.broadcast %78 : vector<2x1xf32> to vector<2x256xf32>
    %82 = arith.mulf %61, %81 : vector<2x256xf32>
    %83 = vector.broadcast %80 : vector<2x1xf32> to vector<2x256xf32>
    %84 = arith.addf %82, %83 : vector<2x256xf32>
    %cst_31 = arith.constant 0.000000e+00 : f32
    %85 = vector.broadcast %cst_31 : f32 to vector<2x256xf32>
    %86 = arith.maximumf %84, %85 : vector<2x256xf32>
    %87 = vector.extract_strided_slice %33 {offsets = [6, 0], sizes = [2, 256], strides = [1, 1]} : vector<8x256xf32> to vector<2x256xf32>
    %88 = tpu.iota {dimensions = array<i32: 1>} : vector<2x256xi32>
    %c128_i32_32 = arith.constant 128 : i32
    %c0_i32_33 = arith.constant 0 : i32
    %89 = arith.cmpi eq, %c128_i32_32, %c0_i32_33 : i32
    %c1_i32_34 = arith.constant 1 : i32
    %90 = arith.select %89, %c1_i32_34, %c128_i32_32 : i32
    %91 = vector.broadcast %90 : i32 to vector<2x256xi32>
    %92 = arith.remsi %88, %91 : vector<2x256xi32>
    %c0_i32_35 = arith.constant 0 : i32
    %93 = vector.broadcast %c0_i32_35 : i32 to vector<2x256xi32>
    %94 = arith.cmpi ne, %92, %93 : vector<2x256xi32>
    %c0_i32_36 = arith.constant 0 : i32
    %95 = vector.broadcast %c0_i32_36 : i32 to vector<2x256xi32>
    %96 = arith.cmpi slt, %92, %95 : vector<2x256xi32>
    %c0_i32_37 = arith.constant 0 : i32
    %97 = arith.cmpi slt, %90, %c0_i32_37 : i32
    %98 = vector.broadcast %97 : i1 to vector<2x256xi1>
    %99 = vector.broadcast %98 : vector<2x256xi1> to vector<2x256xi1>
    %100 = arith.xori %96, %99 : vector<2x256xi1>
    %101 = arith.andi %100, %94 : vector<2x256xi1>
    %102 = vector.broadcast %90 : i32 to vector<2x256xi32>
    %103 = arith.addi %92, %102 : vector<2x256xi32>
    %104 = arith.select %101, %103, %92 : vector<2x256xi1>, vector<2x256xi32>
    %c1_i32_38 = arith.constant 1 : i32
    %105 = tpu.dynamic_rotate %60 by %c1_i32_38 dim 1 : vector<2x256xf32>, i32 -> vector<2x256xf32>
    %c1_i32_39 = arith.constant 1 : i32
    %106 = vector.broadcast %c1_i32_39 : i32 to vector<2x256xi32>
    %107 = arith.cmpi sge, %104, %106 : vector<2x256xi32>
    %cst_40 = arith.constant 0.000000e+00 : f32
    %108 = vector.broadcast %cst_40 : f32 to vector<2x256xf32>
    %109 = arith.select %107, %105, %108 : vector<2x256xi1>, vector<2x256xf32>
    %c255_i32_41 = arith.constant 255 : i32
    %110 = tpu.dynamic_rotate %60 by %c255_i32_41 dim 1 : vector<2x256xf32>, i32 -> vector<2x256xf32>
    %c127_i32_42 = arith.constant 127 : i32
    %111 = vector.broadcast %c127_i32_42 : i32 to vector<2x256xi32>
    %112 = arith.cmpi slt, %104, %111 : vector<2x256xi32>
    %cst_43 = arith.constant 0.000000e+00 : f32
    %113 = vector.broadcast %cst_43 : f32 to vector<2x256xf32>
    %114 = arith.select %112, %110, %113 : vector<2x256xi1>, vector<2x256xf32>
    %115 = tpu.concatenate %109, %60, %114 in 0 : vector<2x256xf32>, vector<2x256xf32>, vector<2x256xf32> -> vector<6x256xf32>
    %c0_44 = arith.constant 0 : index
    %c0_45 = arith.constant 0 : index
    %116 = vector.load %arg3[%c0_44, %c0_45] : memref<2x6xf32, #tpu.memory_space<vmem>>, vector<2x6xf32>
    %cst_46 = arith.constant dense<0.000000e+00> : vector<2x256xf32>
    %117 = tpu.matmul %116, %115, %cst_46 {dimension_numbers = #tpu.dot_dimension_numbers<[1], [0], [0], [1], [0, 0, 1, 1], [], []>} : vector<2x6xf32>, vector<6x256xf32>, vector<2x256xf32> -> vector<2x256xf32>
    %c0_47 = arith.constant 0 : index
    %c0_48 = arith.constant 0 : index
    %118 = vector.load %arg4[%c0_47, %c0_48] : memref<2x1xf32, #tpu.memory_space<vmem>>, vector<2x1xf32>
    %119 = vector.broadcast %118 : vector<2x1xf32> to vector<2x256xf32>
    %120 = arith.addf %117, %119 : vector<2x256xf32>
    %121 = tpu.iota {dimensions = array<i32: 1>} : vector<2x256xi32>
    %c128_i32_49 = arith.constant 128 : i32
    %c0_i32_50 = arith.constant 0 : i32
    %122 = arith.cmpi eq, %c128_i32_49, %c0_i32_50 : i32
    %c1_i32_51 = arith.constant 1 : i32
    %123 = arith.select %122, %c1_i32_51, %c128_i32_49 : i32
    %124 = vector.broadcast %123 : i32 to vector<2x256xi32>
    %125 = arith.remsi %121, %124 : vector<2x256xi32>
    %c0_i32_52 = arith.constant 0 : i32
    %126 = vector.broadcast %c0_i32_52 : i32 to vector<2x256xi32>
    %127 = arith.cmpi ne, %125, %126 : vector<2x256xi32>
    %c0_i32_53 = arith.constant 0 : i32
    %128 = vector.broadcast %c0_i32_53 : i32 to vector<2x256xi32>
    %129 = arith.cmpi slt, %125, %128 : vector<2x256xi32>
    %c0_i32_54 = arith.constant 0 : i32
    %130 = arith.cmpi slt, %123, %c0_i32_54 : i32
    %131 = vector.broadcast %130 : i1 to vector<2x256xi1>
    %132 = vector.broadcast %131 : vector<2x256xi1> to vector<2x256xi1>
    %133 = arith.xori %129, %132 : vector<2x256xi1>
    %134 = arith.andi %133, %127 : vector<2x256xi1>
    %135 = vector.broadcast %123 : i32 to vector<2x256xi32>
    %136 = arith.addi %125, %135 : vector<2x256xi32>
    %137 = arith.select %134, %136, %125 : vector<2x256xi1>, vector<2x256xi32>
    %c2_i32 = arith.constant 2 : i32
    %138 = tpu.dynamic_rotate %86 by %c2_i32 dim 1 : vector<2x256xf32>, i32 -> vector<2x256xf32>
    %c2_i32_55 = arith.constant 2 : i32
    %139 = vector.broadcast %c2_i32_55 : i32 to vector<2x256xi32>
    %140 = arith.cmpi sge, %137, %139 : vector<2x256xi32>
    %cst_56 = arith.constant 0.000000e+00 : f32
    %141 = vector.broadcast %cst_56 : f32 to vector<2x256xf32>
    %142 = arith.select %140, %138, %141 : vector<2x256xi1>, vector<2x256xf32>
    %c1_i32_57 = arith.constant 1 : i32
    %143 = tpu.dynamic_rotate %86 by %c1_i32_57 dim 1 : vector<2x256xf32>, i32 -> vector<2x256xf32>
    %c1_i32_58 = arith.constant 1 : i32
    %144 = vector.broadcast %c1_i32_58 : i32 to vector<2x256xi32>
    %145 = arith.cmpi sge, %137, %144 : vector<2x256xi32>
    %cst_59 = arith.constant 0.000000e+00 : f32
    %146 = vector.broadcast %cst_59 : f32 to vector<2x256xf32>
    %147 = arith.select %145, %143, %146 : vector<2x256xi1>, vector<2x256xf32>
    %c255_i32_60 = arith.constant 255 : i32
    %148 = tpu.dynamic_rotate %86 by %c255_i32_60 dim 1 : vector<2x256xf32>, i32 -> vector<2x256xf32>
    %c127_i32_61 = arith.constant 127 : i32
    %149 = vector.broadcast %c127_i32_61 : i32 to vector<2x256xi32>
    %150 = arith.cmpi slt, %137, %149 : vector<2x256xi32>
    %cst_62 = arith.constant 0.000000e+00 : f32
    %151 = vector.broadcast %cst_62 : f32 to vector<2x256xf32>
    %152 = arith.select %150, %148, %151 : vector<2x256xi1>, vector<2x256xf32>
    %c254_i32 = arith.constant 254 : i32
    %153 = tpu.dynamic_rotate %86 by %c254_i32 dim 1 : vector<2x256xf32>, i32 -> vector<2x256xf32>
    %c126_i32 = arith.constant 126 : i32
    %154 = vector.broadcast %c126_i32 : i32 to vector<2x256xi32>
    %155 = arith.cmpi slt, %137, %154 : vector<2x256xi32>
    %cst_63 = arith.constant 0.000000e+00 : f32
    %156 = vector.broadcast %cst_63 : f32 to vector<2x256xf32>
    %157 = arith.select %155, %153, %156 : vector<2x256xi1>, vector<2x256xf32>
    %158 = tpu.concatenate %142, %147, %86, %152, %157 in 0 : vector<2x256xf32>, vector<2x256xf32>, vector<2x256xf32>, vector<2x256xf32>, vector<2x256xf32> -> vector<10x256xf32>
    %c0_64 = arith.constant 0 : index
    %c0_65 = arith.constant 0 : index
    %159 = vector.load %arg5[%c0_64, %c0_65] : memref<2x10xf32, #tpu.memory_space<vmem>>, vector<2x10xf32>
    %cst_66 = arith.constant dense<0.000000e+00> : vector<2x256xf32>
    %160 = tpu.matmul %159, %158, %cst_66 {dimension_numbers = #tpu.dot_dimension_numbers<[1], [0], [0], [1], [0, 0, 1, 1], [], []>} : vector<2x10xf32>, vector<10x256xf32>, vector<2x256xf32> -> vector<2x256xf32>
    %c0_67 = arith.constant 0 : index
    %c0_68 = arith.constant 0 : index
    %161 = vector.load %arg6[%c0_67, %c0_68] : memref<2x1xf32, #tpu.memory_space<vmem>>, vector<2x1xf32>
    %162 = vector.broadcast %161 : vector<2x1xf32> to vector<2x256xf32>
    %163 = arith.addf %160, %162 : vector<2x256xf32>
    %164 = tpu.concatenate %34, %120, %163, %87 in 0 : vector<2x256xf32>, vector<2x256xf32>, vector<2x256xf32>, vector<2x256xf32> -> vector<8x256xf32>
    %c0_69 = arith.constant 0 : index
    %c0_70 = arith.constant 0 : index
    %165 = vector.load %arg11[%c0_69, %c0_70] : memref<8x1xf32, #tpu.memory_space<vmem>>, vector<8x1xf32>
    %c0_71 = arith.constant 0 : index
    %c0_72 = arith.constant 0 : index
    %166 = vector.load %arg12[%c0_71, %c0_72] : memref<8x1xf32, #tpu.memory_space<vmem>>, vector<8x1xf32>
    %cst_73 = arith.constant dense<0.000000e+00> : vector<8xf32>
    %167 = vector.multi_reduction <add>, %164, %cst_73 [1] : vector<8x256xf32> to vector<8xf32>
    %168 = vector.shape_cast %167 : vector<8xf32> to vector<8x1xf32>
    %cst_74 = arith.constant 2.560000e+02 : f32
    %169 = vector.broadcast %cst_74 : f32 to vector<8x1xf32>
    %170 = arith.divf %168, %169 : vector<8x1xf32>
    %171 = vector.broadcast %170 : vector<8x1xf32> to vector<8x256xf32>
    %172 = arith.subf %164, %171 : vector<8x256xf32>
    %173 = arith.mulf %172, %172 : vector<8x256xf32>
    %cst_75 = arith.constant dense<0.000000e+00> : vector<8xf32>
    %174 = vector.multi_reduction <add>, %173, %cst_75 [1] : vector<8x256xf32> to vector<8xf32>
    %175 = vector.shape_cast %174 : vector<8xf32> to vector<8x1xf32>
    %cst_76 = arith.constant 2.560000e+02 : f32
    %176 = vector.broadcast %cst_76 : f32 to vector<8x1xf32>
    %177 = arith.divf %175, %176 : vector<8x1xf32>
    %cst_77 = arith.constant 9.99999974E-6 : f32
    %178 = vector.broadcast %cst_77 : f32 to vector<8x1xf32>
    %179 = arith.addf %177, %178 : vector<8x1xf32>
    %180 = math.rsqrt %179 : vector<8x1xf32>
    %181 = arith.mulf %165, %180 : vector<8x1xf32>
    %182 = arith.mulf %170, %181 : vector<8x1xf32>
    %183 = arith.subf %166, %182 : vector<8x1xf32>
    %184 = vector.broadcast %181 : vector<8x1xf32> to vector<8x256xf32>
    %185 = arith.mulf %164, %184 : vector<8x256xf32>
    %186 = vector.broadcast %183 : vector<8x1xf32> to vector<8x256xf32>
    %187 = arith.addf %185, %186 : vector<8x256xf32>
    %cst_78 = arith.constant 0.000000e+00 : f32
    %188 = vector.broadcast %cst_78 : f32 to vector<8x256xf32>
    %189 = arith.maximumf %187, %188 : vector<8x256xf32>
    %c0_79 = arith.constant 0 : index
    %c0_80 = arith.constant 0 : index
    %190 = vector.load %arg13[%c0_79, %c0_80] : memref<8x256xf32, #tpu.memory_space<vmem>>, vector<8x256xf32>
    tpu.vector_store %arg13[%c0_79, %c0_80], %189 {strides = array<i32>} : memref<8x256xf32, #tpu.memory_space<vmem>>, vector<8x256xf32>,
    return
  }
}

</mosaic_0001>

<bundles_post_ra>
// kernel: tpu_custom_call.1
= control target key start
LH: loop header
LB: loop body
LE: loop exit
PB: predicated region body
PF: predicated region fallthrough
CT: control target
= control target key end

     0   :  { %s1019_s0 = inlined_call_operand.vmem [shape: f32[4,256], index: 0, kind: input, shape index: {}]   ;;  %s1020_s1 = inlined_call_operand.vmem [shape: f32[8,12], index: 1, kind: input, shape index: {}]   ;;  %s1021_s2 = inlined_call_operand.vmem [shape: f32[8,1], index: 2, kind: input, shape index: {}]   ;;  %s1022_s3 = inlined_call_operand.vmem [shape: f32[2,6], index: 3, kind: input, shape index: {}]   ;;  %s1023_s4 = inlined_call_operand.vmem [shape: f32[2,1], index: 4, kind: input, shape index: {}]   ;;  %s1024_s5 = inlined_call_operand.vmem [shape: f32[2,10], index: 5, kind: input, shape index: {}]   ;;  %s1025_s6 = inlined_call_operand.vmem [shape: f32[2,1], index: 6, kind: input, shape index: {}]   ;;  %s1026_s7 = inlined_call_operand.vmem [shape: f32[2,1], index: 7, kind: input, shape index: {}]   ;;  %s1027_s8 = inlined_call_operand.vmem [shape: f32[2,1], index: 8, kind: input, shape index: {}]   ;;  %s1028_s9 = inlined_call_operand.vmem [shape: f32[2,1], index: 9, kind: input, shape index: {}]   ;;  %s1029_s10 = inlined_call_operand.vmem [shape: f32[2,1], index: 10, kind: input, shape index: {}]   ;;  %s1030_s11 = inlined_call_operand.vmem [shape: f32[8,1], index: 11, kind: input, shape index: {}]   ;;  %s1031_s12 = inlined_call_operand.vmem [shape: f32[8,1], index: 12, kind: input, shape index: {}]   ;;  %s1032_s13 = inlined_call_operand.hbm [shape: f32[8,256], index: 13, kind: output, shape index: {}]  }
   0x1   :  { %v45_v0 = vld [vmem:[%s1019_s0] sm:$0xff] }
   0x2   :  { %v74_v1 = vcombine.high %v45_v0, %v45_v0 }
   0x3   :  { %18 = vsyncpa [#allocation3], 0  ;;  %v726_v3 = vmov 0.0   ;;  %s727_s27 = smov 1   ;;  %v104_v4 = vld [vmem:[%s1021_s2] sm:$0xff]  ;;  %v728_v5 = vmov 0   ;;  %v46_v6 = vlaneseq  ;;  %v98_v16 = vcombine.low %v45_v0, %v45_v0 }
   0x4   :  { %v662_v2 = vpack.i.bf16 %v74_v1, %v45_v0  ;;  %184 = vmatprep.mubr.f32.mxu0 %v726_v3  ;;  %407 = vmatprep.mubr.f32.mxu1 %v726_v3  ;;  %s729_s0 = smov 127   ;;  %vm100_vm3 = vcmask 1043456   ;;  %vm730_vm6 = vmmov 1   ;;  %v103_v29 = vld [vmem:[%s1020_s1] sm:$0xff]  ;;  %vm110_vm8 = vcmask 97280   ;;  %s732_s20 = smov 2  }
   0x5   :  { %672 = vset.pattern.permute.xlu1 %v728_v5  ;;  %673 = vset.pattern.permute.xlu0 %v728_v5  ;;  %v814_v7 = vand.u32 127, %v46_v6  ;;  %vm643_vm7 = vmpackc.low %vm100_vm3, %vm730_vm6  ;;  %vm244_vm9 = vcmask 1045508   ;;  %vm193_vm10 = vcmask 1043458   ;;  %v242_v6 = vld [vmem:[%s1028_s9] sm:$0x3]  ;;  %vm320_vm15 = vcmask 1041408  }
   0x6   :  { %663 = vrot.lane.b32.xlu0 %v662_v2, %s727_s27  ;;  %107 = vperm.xlu1 %672, %v104_v4  }
   0x7   :  { %v48_v8 = vadd.s32 128, %v814_v7  ;;  %vm80_vm0 = vcmp.lt.s32.totalorder %v814_v7, 1  ;;  %vm83_vm2 = vcmp.ge.s32.totalorder %v814_v7, 1  ;;  %vm91_vm4 = vcmp.lt.s32.totalorder %v814_v7, 127 }
   0x8   :  { %vm451_vm11 = vcmp.lt.s32.totalorder %v814_v7, 126  ;;  %vm424_vm12 = vcmp.lt.s32.totalorder %v814_v7, 2  ;;  %vm427_vm13 = vcmp.ge.s32.totalorder %v814_v7, 2 }
   0x9   :  { %v817_v9 = vand.u32 127, %v48_v8 }
   0xa   :  { %668 = vrot.lane.b32.xlu0 %v662_v2, %s729_s0  ;;  %v191_v2 = vld [vmem:[%s1026_s7] sm:$0x3] }
   0xb   :  { %vm84_vm1 = vcmp.ge.s32.totalorder %v817_v9, 1  ;;  %vm95_vm5 = vcmp.lt.s32.totalorder %v817_v9, 127  ;;  %vm428_vm14 = vcmp.ge.s32.totalorder %v817_v9, 2 }
  0x78   :  { %v664_v10 = vpop.permute.xlu0 %663 }
  0x79   :  { %v666_v11 = vunpack.i.h.bf16 %v664_v10  ;;  %v665_v12 = vunpack.i.l.bf16 %v664_v10 }
  0x7b   :  { %v82_v13 = vsel %vm80_vm0, %v666_v11, %v665_v12  ;;  %v81_v14 = vsel %vm80_vm0, %v665_v12, %v666_v11 }
  0x7c   :  { %v669_v15 = vpop.permute.xlu0 %668  ;;  %v86_v19 = vsel %vm84_vm1, %v81_v14, 0.0  ;;  %v85_v20 = vsel %vm83_vm2, %v82_v13, 0.0 }
  0x7d   :  { %v671_v17 = vunpack.i.h.bf16 %v669_v15  ;;  %v670_v18 = vunpack.i.l.bf16 %v669_v15  ;;  %v102_v24 = vsel %vm100_vm3, %v86_v19, %v45_v0  ;;  %v101_v26 = vsel %vm100_vm3, %v85_v20, %v98_v16  ;;  %v243_v16 = vld [vmem:[%s1029_s10] sm:$0x3] }
  0x7e   :  { %v192_v20 = vld [vmem:[%s1027_s8] sm:$0x3]  ;;  %s731_s8 = smov 126  }
  0x7f   :  { %v93_v21 = vsel %vm91_vm4, %v671_v17, %v670_v18  ;;  %v92_v22 = vsel %vm91_vm4, %v670_v18, %v671_v17 }
  0x80   :  { %v97_v23 = vsel %vm95_vm5, %v93_v21, 0.0  ;;  %v96_v25 = vsel %vm91_vm4, %v92_v22, 0.0 }
  0x81   :  { %v642_v27 = vpack.c.bf16 %v97_v23, %v102_v24  ;;  %v645_v28 = vpack.c.bf16 %v96_v25, %v101_v26 }
  0x83   :  { %644 = vmatprep.subr.msk.bf16.mxu0 %vm643_vm7, %v642_v27 }
  0x84   :  { %647 = vmatpush1.bf16.msk.msra.mxu0 %vm643_vm7, %v645_v28  ;;  %vm455_vm7 = vcmp.lt.s32.totalorder %v817_v9, 126 }
  0x85   :  { %v108_v30 = vpop.permute.xlu1 %107 }
  0x87   :  { %635 = vmatmul.mubr.msk.f32.vlgmr.msra.gmra.mrb[0].mxu0 %vm110_vm8, %v103_v29  ;;  %vm336_vm8 = vcmask 1045504  }
 0x15a   :  { %v186_v31 = vpop.f32.mrb[0].mxu0 }
 0x15b   :  { %v847_v32 = vadd.f32 %v186_v31, %v108_v30  ;;  %v188_v33 = vpop.f32.mrb[1].mxu0 }
 0x15c   :  { %v849_v34 = vadd.f32 %v188_v33, %v108_v30 }
 0x15d   :  { %v245_v35 = vsel %vm244_vm9, %v847_v32, 0.0  ;;  %v194_v36 = vsel %vm193_vm10, %v847_v32, 0.0 }
 0x15e   :  { %v246_v37 = vsel %vm244_vm9, %v849_v34, 0.0  ;;  %v195_v38 = vsel %vm193_vm10, %v849_v34, 0.0 }
 0x15f   :  { %v247_v39 = vadd.f32 %v246_v37, %v245_v35  ;;  %v196_v40 = vadd.f32 %v195_v38, %v194_v36 }
 0x161   :  { %248 = vadd.xlane.f32.xlu1 %v247_v39  ;;  %197 = vadd.xlane.f32.xlu0 %v196_v40 }
 0x1ee   :  { %v249_v41 = vpop.xlane.xlu1 %248  ;;  %v198_v42 = vpop.xlane.xlu0 %197 }
 0x1ef   :  { %v250_v43 = vmul.f32 0.00390625, %v249_v41  ;;  %v200_v44 = vmul.f32 0.00390625, %v198_v42 }
 0x1f1   :  { %v251_v45 = vsub.f32 %v847_v32, %v250_v43  ;;  %v252_v46 = vsub.f32 %v849_v34, %v250_v43  ;;  %v201_v47 = vsub.f32 %v847_v32, %v200_v44  ;;  %v202_v48 = vsub.f32 %v849_v34, %v200_v44 }
 0x1f3   :  { %v253_v49 = vmul.f32 %v251_v45, %v251_v45  ;;  %v254_v50 = vmul.f32 %v252_v46, %v252_v46  ;;  %v203_v51 = vmul.f32 %v201_v47, %v201_v47  ;;  %v204_v52 = vmul.f32 %v202_v48, %v202_v48 }
 0x1f5   :  { %v255_v53 = vsel %vm244_vm9, %v253_v49, 0.0  ;;  %v256_v54 = vsel %vm244_vm9, %v254_v50, 0.0  ;;  %v205_v55 = vsel %vm193_vm10, %v203_v51, 0.0  ;;  %v206_v56 = vsel %vm193_vm10, %v204_v52, 0.0  ;;  %v477_v49 = vld [vmem:[%s1025_s6] sm:$0x3] }
 0x1f6   :  { %v257_v57 = vadd.f32 %v256_v54, %v255_v53  ;;  %v207_v58 = vadd.f32 %v206_v56, %v205_v55  ;;  %v326_v50 = vld [vmem:[%s1023_s4] sm:$0x3] }
 0x1f8   :  { %258 = vadd.xlane.f32.xlu0 %v257_v57  ;;  %208 = vadd.xlane.f32.xlu1 %v207_v58 }
 0x285   :  { %v209_v59 = vpop.xlane.xlu1 %208  ;;  %v259_v60 = vpop.xlane.xlu0 %258 }
 0x286   :  { %v210_v61 = vmul.f32 0.00390625, %v209_v59  ;;  %v260_v62 = vmul.f32 0.00390625, %v259_v60 }
 0x288   :  { %v211_v63 = vadd.f32 1e-05, %v210_v61  ;;  %v261_v0 = vadd.f32 1e-05, %v260_v62 }
 0x28a   :  { %696 = vrsqrt.f32 %v211_v63 }
 0x28b   :  { %698 = vrsqrt.f32 %v261_v0 }
 0x294   :  { %v697_v1 = vpop.eup %696 }
 0x295   :  { %v699_v4 = vpop.eup %698  ;;  %v214_v5 = vrot.slane %v697_v1, 2 }
 0x296   :  { %v264_v8 = vrot.slane %v699_v4, 4 }
 0x297   :  { %v216_v10 = vmul.f32 %v214_v5, %v191_v2 }
 0x298   :  { %v266_v11 = vmul.f32 %v264_v8, %v242_v6 }
 0x299   :  { %226 = vperm.xlu1 %672, %v216_v10   ;;  %v218_v12 = vrot.slane %v216_v10, 6 }
 0x29a   :  { %276 = vperm.xlu0 %673, %v266_v11   ;;  %v268_v13 = vrot.slane %v266_v11, 4 }
 0x29b   :  { %v220_v15 = vmul.f32 %v218_v12, %v200_v44 }
 0x29c   :  { %v270_v14 = vmul.f32 %v268_v13, %v250_v43 }
 0x29d   :  { %v222_v19 = vrot.slane %v220_v15, 2 }
 0x29e   :  { %v272_v17 = vrot.slane %v270_v14, 4 }
 0x29f   :  { %v224_v21 = vsub.f32 %v192_v20, %v222_v19 }
 0x2a0   :  { %v274_v18 = vsub.f32 %v243_v16, %v272_v17 }
 0x2a2   :  { %284 = vperm.xlu1 %672, %v274_v18  }
 0x2a6   :  { %234 = vperm.xlu1 %672, %v224_v21  }
 0x318   :  { %v227_v23 = vpop.permute.xlu1 %226 }
 0x319   :  { %v277_v22 = vpop.permute.xlu0 %276  ;;  %v228_v26 = vrot.slane %v227_v23, 6 }
 0x31a   :  { %v278_v24 = vrot.slane %v277_v22, 4 }
 0x31b   :  { %v230_v35 = vmul.f32 %v228_v26, %v847_v32  ;;  %v231_v39 = vmul.f32 %v228_v26, %v849_v34 }
 0x31c   :  { %v280_v27 = vmul.f32 %v278_v24, %v847_v32  ;;  %v281_v28 = vmul.f32 %v278_v24, %v849_v34 }
 0x321   :  { %v285_v25 = vpop.permute.xlu1 %284 }
 0x322   :  { %v286_v29 = vrot.slane %v285_v25, 4 }
 0x324   :  { %v881_v30 = vadd.f32 %v286_v29, %v280_v27  ;;  %v883_v31 = vadd.f32 %v286_v29, %v281_v28 }
 0x325   :  { %v235_v33 = vpop.permute.xlu1 %234 }
 0x326   :  { %v290_v36 = vmax.f32 %v881_v30, 0.0  ;;  %v291_v37 = vmax.f32 %v883_v31, 0.0  ;;  %v236_v38 = vrot.slane %v235_v33, 6 }
 0x328   :  { %v416_v40 = vrot.slane %v290_v36, 4  ;;  %v417_v41 = vrot.slane %v291_v37, 4  ;;  %v893_v42 = vadd.f32 %v236_v38, %v230_v35  ;;  %v895_v43 = vadd.f32 %v236_v38, %v231_v39 }
 0x32a   :  { %v240_v44 = vmax.f32 %v893_v42, 0.0  ;;  %v674_v45 = vpack.i.bf16 %v417_v41, %v416_v40  ;;  %v241_v47 = vmax.f32 %v895_v43, 0.0 }
 0x32c   :  { %675 = vrot.lane.b32.xlu1 %v674_v45, %s727_s27  ;;  %v294_v46 = vrot.slane %v240_v44, 2  ;;  %v295_v48 = vrot.slane %v241_v47, 2 }
 0x32e   :  { %298 = vrot.lane.b32.xlu0 %v294_v46, %s727_s27 }
 0x330   :  { %306 = vrot.lane.b32.xlu1 %v294_v46, %s729_s0 }
 0x332   :  { %690 = vrot.lane.b32.xlu0 %v674_v45, %s731_s8 }
 0x334   :  { %308 = vrot.lane.b32.xlu1 %v295_v48, %s729_s0 }
 0x336   :  { %480 = vperm.xlu0 %673, %v477_v49  }
 0x338   :  { %680 = vrot.lane.b32.xlu1 %v674_v45, %s732_s20 }
 0x33c   :  { %685 = vrot.lane.b32.xlu1 %v674_v45, %s729_s0 }
 0x340   :  { %300 = vrot.lane.b32.xlu1 %v295_v48, %s727_s27  ;;  %s733_s27 = smov [#allocation2]  }
 0x341   :  { %s625_s28 = sshll.u32 %s733_s27, 4  ;;  %s626_s28 = int_to_ptr.vmem [resolvable:$true] %s625_s28 }
 0x342   :  { %p707_p1 = scmp.lt.s32.totalorder %s626_s28, %s626_s28 }
 0x344   :  { %329 = vperm.xlu1 %672, %v326_v50  }
 0x39e   :  { %v676_v51 = vpop.permute.xlu1 %675 }
 0x39f   :  { %v678_v54 = vunpack.i.h.bf16 %v676_v51  ;;  %v677_v55 = vunpack.i.l.bf16 %v676_v51 }
 0x3a0   :  { %v299_v52 = vpop.permute.xlu0 %298 }
 0x3a1   :  { %v435_v58 = vsel %vm80_vm0, %v677_v55, %v678_v54  ;;  %v436_v59 = vsel %vm80_vm0, %v678_v54, %v677_v55 }
 0x3a2   :  { %v307_v53 = vpop.permute.xlu1 %306  ;;  %v437_v63 = vsel %vm83_vm2, %v436_v59, 0.0  ;;  %v438_v0 = vsel %vm84_vm1, %v435_v58, 0.0 }
 0x3a3   :  { %v460_v11 = vrot.slane %v437_v63, 6  ;;  %v461_v12 = vrot.slane %v438_v0, 6 }
 0x3a4   :  { %v691_v56 = vpop.permute.xlu0 %690 }
 0x3a5   :  { %v693_v60 = vunpack.i.h.bf16 %v691_v56  ;;  %v692_v61 = vunpack.i.l.bf16 %v691_v56 }
 0x3a6   :  { %v309_v57 = vpop.permute.xlu1 %308 }
 0x3a7   :  { %v310_v4 = vsel %vm91_vm4, %v307_v53, %v309_v57  ;;  %v311_v5 = vsel %vm91_vm4, %v309_v57, %v307_v53  ;;  %v453_v6 = vsel %vm451_vm11, %v693_v60, %v692_v61  ;;  %v452_v20 = vsel %vm451_vm11, %v692_v61, %v693_v60 }
 0x3a8   :  { %v312_v16 = vsel %vm91_vm4, %v310_v4, 0.0  ;;  %v313_v17 = vsel %vm95_vm5, %v311_v5, 0.0  ;;  %v457_v21 = vsel %vm455_vm7, %v453_v6, 0.0  ;;  %v456_v42 = vsel %vm451_vm11, %v452_v20, 0.0  ;;  %v583_v20 = vld [vmem:[%s1031_s12] sm:$0xff] }
 0x3a9   :  { %v316_v26 = vrot.slane %v312_v16, 4  ;;  %v317_v27 = vrot.slane %v313_v17, 4 }
 0x3aa   :  { %v681_v62 = vpop.permute.xlu1 %680 }
 0x3ab   :  { %v683_v1 = vunpack.i.h.bf16 %v681_v62  ;;  %v682_v2 = vunpack.i.l.bf16 %v681_v62 }
 0x3ad   :  { %v425_v8 = vsel %vm424_vm12, %v682_v2, %v683_v1  ;;  %v426_v10 = vsel %vm424_vm12, %v683_v1, %v682_v2 }
 0x3ae   :  { %v429_v13 = vsel %vm427_vm13, %v426_v10, 0.0  ;;  %v430_v14 = vsel %vm428_vm14, %v425_v8, 0.0  ;;  %v686_v15 = vpop.permute.xlu1 %685 }
 0x3af   :  { %v688_v18 = vunpack.i.h.bf16 %v686_v15  ;;  %v687_v19 = vunpack.i.l.bf16 %v686_v15  ;;  %v470_v22 = vsel %vm320_vm15, %v429_v13, %v460_v11  ;;  %v471_v23 = vsel %vm320_vm15, %v430_v14, %v461_v12 }
 0x3b0   :  { %v472_v41 = vsel %vm100_vm3, %v470_v22, %v290_v36  ;;  %v473_v48 = vsel %vm100_vm3, %v471_v23, %v291_v37  ;;  %v325_v37 = vld [vmem:[%s1022_s3] sm:$0x3] }
 0x3b1   :  { %v443_v24 = vsel %vm91_vm4, %v687_v19, %v688_v18  ;;  %v444_v25 = vsel %vm91_vm4, %v688_v18, %v687_v19 }
 0x3b2   :  { %v445_v28 = vsel %vm91_vm4, %v443_v24, 0.0  ;;  %v446_v29 = vsel %vm95_vm5, %v444_v25, 0.0  ;;  %v301_v33 = vpop.permute.xlu1 %300 }
 0x3b3   :  { %v466_v35 = vrot.slane %v445_v28, 2  ;;  %v467_v38 = vrot.slane %v446_v29, 2  ;;  %v302_v39 = vsel %vm80_vm0, %v299_v52, %v301_v33  ;;  %v303_v40 = vsel %vm80_vm0, %v301_v33, %v299_v52  ;;  %vm649_vm0 = vmpackc.low %vm320_vm15, %vm730_vm6 }
 0x3b4   :  { %v304_v45 = vsel %vm83_vm2, %v303_v40, 0.0  ;;  %v305_v46 = vsel %vm84_vm1, %v302_v39, 0.0  ;;  %vm332_vm1 = vcmask 48128   ;;  %vm483_vm2 = vcmask 80896  }
 0x3b5   :  { %v322_v49 = vsel %vm320_vm15, %v305_v46, %v241_v47  ;;  %v321_v30 = vsel %vm320_vm15, %v304_v45, %v240_v44  ;;  %v475_v36 = vsel %vm336_vm8, %v473_v48, %v467_v38  ;;  %v474_v50 = vsel %vm336_vm8, %v472_v41, %v466_v35  ;;  %v476_v47 = vld [vmem:[%s1024_s5] sm:$0x3]  ;;  %v481_v55 = vpop.permute.xlu0 %480 }
 0x3b6   :  { %v324_v9 = vsel %vm100_vm3, %v322_v49, %v317_v27  ;;  %v323_v31 = vsel %vm100_vm3, %v321_v30, %v316_v26  ;;  %v648_v43 = vpack.c.bf16 %v457_v21, %v475_v36  ;;  %v651_v44 = vpack.c.bf16 %v456_v42, %v474_v50 }
 0x3b7   :  { %636 = vmatprep.subr.msk.mxu1 %vm336_vm8, %v324_v9 }
 0x3b8   :  { %637 = vmatpush1.msk.msra.mxu1 %vm336_vm8, %v323_v31 }
 0x3b9   :  { %638 = vmatmul.mubr.msk.f32.vlgmr.msra.gmra.mrb[0].mxu1 %vm332_vm1, %v325_v37  ;;  %650 = vmatprep.subr.msk.bf16.mxu1 %vm649_vm0, %v648_v43 }
 0x3ba   :  { %653 = vmatpush1.bf16.msk.msra.mxu1 %vm649_vm0, %v651_v44  ;;  %557 = vmatprep.mubr.f32.mxu1 %v726_v3 }
 0x3bd   :  { %641 = vmatmul.mubr.msk.f32.vlgmr.msra.gmra.mrb[2].mxu1 %vm483_vm2, %v476_v47 }
 0x3c3   :  { %v330_v51 = vpop.permute.xlu1 %329 }
 0x48c   :  { %v409_v52 = vpop.f32.mrb[0].mxu1 }
 0x48d   :  { %v410_v7 = vadd.f32 %v409_v52, %v330_v51  ;;  %v411_v53 = vpop.f32.mrb[1].mxu1 }
 0x48e   :  { %v412_v54 = vadd.f32 %v411_v53, %v330_v51 }
 0x48f   :  { %v566_v56 = vrot.slane %v410_v7, 6 }
 0x490   :  { %v559_v57 = vpop.f32.mrb[2].mxu1  ;;  %v567_v58 = vrot.slane %v412_v54, 6 }
 0x491   :  { %v560_v59 = vadd.f32 %v559_v57, %v481_v55  ;;  %v561_v60 = vpop.f32.mrb[3].mxu1  ;;  %v576_v3 = vsel %vm320_vm15, %v847_v32, %v566_v56 }
 0x492   :  { %v562_v61 = vadd.f32 %v561_v60, %v481_v55  ;;  %v577_v0 = vsel %vm320_vm15, %v849_v34, %v567_v58 }
 0x493   :  { %v572_v62 = vrot.slane %v560_v59, 4 }
 0x494   :  { %v573_v63 = vrot.slane %v562_v61, 4 }
 0x495   :  { %v578_v1 = vsel %vm100_vm3, %v576_v3, %v572_v62 }
 0x496   :  { %v579_v2 = vsel %vm100_vm3, %v577_v0, %v573_v63  ;;  %v580_v4 = vsel %vm336_vm8, %v578_v1, %v847_v32  ;;  %v582_v32 = vld [vmem:[%s1030_s11] sm:$0xff]  ;;  %s702_s11 = scalar_lea.vmem %s626_s28, 256 }
 0x497   :  { %v581_v5 = vsel %vm336_vm8, %v579_v2, %v849_v34  ;;  %p703_p0 = scmp.ne.s32.totalorder %s626_s28, %s702_s11  ;;  %p708_p2 = scmp.lt.s32.totalorder %s702_s11, %s702_s11 }
 0x498   :  { %v584_v6 = vadd.f32 %v581_v5, %v580_v4 }
 0x499   :  { %p709_p3 = por %p708_p2, %p707_p1 }
 0x49a   :  { %585 = vadd.xlane.f32.xlu1 %v584_v6 }
 0x49b   :  { %p710_p4 = pnand %p709_p3, %p703_p0 }
 0x527   :  { %v586_v8 = vpop.xlane.xlu1 %585 }
 0x528   :  { %v587_v10 = vmul.f32 0.00390625, %v586_v8 }
 0x52a   :  { %v588_v11 = vsub.f32 %v580_v4, %v587_v10  ;;  %v589_v12 = vsub.f32 %v581_v5, %v587_v10 }
 0x52c   :  { %v590_v13 = vmul.f32 %v588_v11, %v588_v11  ;;  %v591_v14 = vmul.f32 %v589_v12, %v589_v12 }
 0x52e   :  { %v592_v15 = vadd.f32 %v591_v14, %v590_v13 }
 0x530   :  { %593 = vadd.xlane.f32.xlu0 %v592_v15 }
 0x5bd   :  { %v594_v16 = vpop.xlane.xlu0 %593 }
 0x5be   :  { %v595_v17 = vmul.f32 0.00390625, %v594_v16 }
 0x5c0   :  { %v596_v18 = vadd.f32 1e-05, %v595_v17 }
 0x5c2   :  { %700 = vrsqrt.f32 %v596_v18 }
 0x5cc   :  { %v701_v19 = vpop.eup %700 }
 0x5cd   :  { %v598_v34 = vmul.f32 %v701_v19, %v582_v32 }
 0x5cf   :  { %603 = vperm.xlu0 %673, %v598_v34   ;;  %v599_v21 = vmul.f32 %v598_v34, %v587_v10 }
 0x5d1   :  { %v600_v22 = vsub.f32 %v583_v20, %v599_v21 }
 0x5d3   :  { %610 = vperm.xlu1 %672, %v600_v22  }
 0x64e   :  { %v604_v23 = vpop.permute.xlu0 %603 }
 0x64f   :  { %v606_v24 = vmul.f32 %v604_v23, %v580_v4  ;;  %v607_v25 = vmul.f32 %v604_v23, %v581_v5 }
 0x652   :  { %v611_v26 = vpop.permute.xlu1 %610 }
 0x653   :  { %v613_v27 = vadd.f32 %v611_v26, %v606_v24  ;;  %v614_v28 = vadd.f32 %v611_v26, %v607_v25 }
 0x655   :  { %v615_v29 = vmax.f32 %v613_v27, 0.0  ;;  %v616_v33 = vmax.f32 %v614_v28, 0.0 }
 0x657   :  { %617 = vst [vmem:[#allocation2] sm:$0xff] %v615_v29  ;;  %618 = vst [vmem:[#allocation2 + $0x8] sm:$0xff] %v616_v33 }
 0x658   :  { %713 = shalt.err (!%p710_p4)
}
 0x659   :  { %s714_s0 = scalar_lea.hbm %s1032_s13, 256 }
 0x65a   :  { %p715_p5 = scmp.ne.s32.totalorder %s1032_s13, %s714_s0  ;;  %p718_p6 = scmp.lt.u32.totalorder %s714_s0, %s1032_s13 }
 0x65c   :  { %p720_p7 = pnand %p718_p6, %p715_p5 }
 0x65e   :  { %723 = shalt.err (!%p720_p7)
}
 0x65f   :  { %628 = dma.vmem_to_hbm [thread:$0]  %s626_s28, 256, %s1032_s13, [#allocation3]  }
 0x660   :  { %724 = dma.done.wait [#allocation3], 256  }
 0x661   :  { %725 = vsyncadd [#allocation3], 4294967040 }
 0x662   :  { %632 = vsyncpa [#allocation3], 1 }

</bundles_post_ra>
